<compile_context>
chip_gen: v7x
topology: tpu7x:2x2x1
jax: 0.10.0
libtpu: 0.0.40
codegen_flags: <defaults>
</compile_context>

<pallas_src>
import jax
import jax.numpy as jnp
from jax.experimental import pallas as pl
from jax.experimental.pallas import tpu as pltpu

_LANE = 128  # padded output width (full vreg lane dim)


def _round_up(x, m):
    return ((x + m - 1) // m) * m


def _linear_kernel(x_ref, w_ref, b_ref, o_ref):
    # x_ref: (tm, K) bf16, w_ref: (K, 128) bf16 (resident), b_ref: (1, 128) f32,
    # o_ref: (tm, 128) f32.  MXU bf16 matmul with f32 accumulation.
    o_ref[...] = (
        jnp.dot(x_ref[...], w_ref[...], preferred_element_type=jnp.float32)
        + b_ref[...]
    ).astype(o_ref.dtype)


def _vmem_capacity_bytes():
    try:
        return int(pltpu.get_tpu_info().vmem_capacity_bytes)
    except Exception:
        return 64 << 20  # conservative fallback (v7x per-TC)


def bbox_pred_pallas(x_flat, w_pad, b_pad, box_dim):
    """y = x @ W + b with the output lane-padded to 128, tiled over M.

    x_flat: (M, K) bf16 activations.
    w_pad:  (K, 128) bf16; real weights in the first `box_dim` columns, zeros
            elsewhere (so padded output columns are exactly 0 and sliced away).
    b_pad:  (1, 128) f32 likewise.
    Returns (M, box_dim) f32.
    """
    M, K = x_flat.shape
    Kw, Np = w_pad.shape
    assert K == Kw and Np == _LANE
    x_item = x_flat.dtype.itemsize
    w_item = w_pad.dtype.itemsize

    w_bytes = K * Np * w_item          # resident weight, single-buffered
    x_row_bytes = K * x_item           # one row of an x tile
    out_row_bytes = Np * 4             # one f32 output row

    # Generation-aware VMEM budget: ~75% of physical capacity, capped at
    # 96 MiB on the 128 MiB chips (v5e/v6e); ~48 MiB on v7x's 64 MiB.
    vmem_cap = _vmem_capacity_bytes()
    usable = min((3 * vmem_cap) // 4, 96 << 20)
    margin = 2 << 20

    # Tile size over M: spend the budget (minus the resident weight) on a
    # double-buffered x tile + double-buffered f32 output tile.
    budget = usable - w_bytes - margin
    per_row = 2 * x_row_bytes + 2 * out_row_bytes
    tm = budget // per_row if budget > 0 else 8
    tm = max(8, min(2048, (tm // 8) * 8))
    tm = min(tm, _round_up(M, 8))      # don't allocate past the data
    # TODO(synk): for very large input_size (K >~ 160K the resident bf16 W no
    # longer fits v7x's 64 MiB VMEM) add an innermost "arbitrary" K grid axis
    # with an f32 accumulator and stream W as (tk, 128) blocks.

    grid = (pl.cdiv(M, tm),)           # ragged last block handled by Pallas

    vmem_bytes = (2 * tm * x_row_bytes        # x, double-buffered
                  + w_bytes + Np * 4          # W + bias, single-buffered
                  + 2 * tm * out_row_bytes    # out, double-buffered
                  + margin)
    vmem_bytes = int(min(max(vmem_bytes, 16 << 20), (7 * vmem_cap) // 8))

    out = pl.pallas_call(
        _linear_kernel,
        out_shape=jax.ShapeDtypeStruct((M, Np), jnp.float32),
        grid_spec=pltpu.PrefetchScalarGridSpec(
            num_scalar_prefetch=0,
            grid=grid,
            in_specs=[
                # x streamed over M (default double-buffered; Buffered(3) is a
                # possible further win -- sweep 2 vs 3 on hardware).
                pl.BlockSpec((tm, K), lambda i: (i, 0)),
                # W / bias: constant index_map -> resident, single-buffered.
                pl.BlockSpec((K, Np), lambda i: (0, 0),
                             pipeline_mode=pl.Buffered(1)),
                pl.BlockSpec((1, Np), lambda i: (0, 0),
                             pipeline_mode=pl.Buffered(1)),
            ],
            out_specs=pl.BlockSpec((tm, Np), lambda i: (i, 0)),
        ),
        compiler_params=pltpu.CompilerParams(
            # TODO(synk): on v7x verify "parallel" shards the M grid across
            # both TensorCores; if not, switch this axis to pltpu.CORE_PARALLEL.
            dimension_semantics=("parallel",),
            vmem_limit_bytes=vmem_bytes,
        ),
        cost_estimate=pl.CostEstimate(
            flops=2 * M * K * box_dim,   # only the useful output columns
            transcendentals=0,
            bytes_accessed=(M * K * x_item + K * Np * w_item + Np * 4
                            + M * Np * 4),
        ),
    )(x_flat, w_pad, b_pad)

    # TODO(synk): if the consumer can accept the lane-padded (M, 128) layout
    # (or fuse this slice into its first op), drop this copy entirely.
    return out[:, :box_dim]


class BoxOnlyLayersPallas:
    """JAX/Pallas re-implementation of BoxOnlyLayers.

    bbox_pred = Linear(input_size, box_dim), weight ~ Normal(0, 0.001),
    bias = 0. num_bbox_reg_classes is always 1 in the reference (both branches
    of the ternary return 1). The weight is stored transposed, lane-padded to
    (input_size, 128), and kept in bf16 (MXU-native, f32 accumulation); only
    the first box_dim columns are real.
    """

    def __init__(self, channels, height, width, box_dim, num_classes, key):
        input_size = channels * (height or 1) * (width or 1)
        self.num_classes = num_classes
        self.box_dim = box_dim
        w = 0.001 * jax.random.normal(key, (input_size, box_dim), dtype=jnp.float32)
        b = jnp.zeros((box_dim,), dtype=jnp.float32)
        # Static lane padding to 128 -> unmasked, lane-dense stores in-kernel.
        self.w_pad = jnp.pad(w, ((0, 0), (0, _LANE - box_dim))).astype(jnp.bfloat16)
        self.b_pad = jnp.pad(b, (0, _LANE - box_dim)).reshape(1, _LANE)  # f32

    # Real (unpadded) parameters, for reference checks.
    @property
    def weight(self):  # (input_size, box_dim) bf16
        return self.w_pad[:, : self.box_dim]

    @property
    def bias(self):    # (box_dim,) f32
        return self.b_pad[0, : self.box_dim]

    def __call__(self, x, *, force_pallas=False):
        # x: NCHW (or already 2-D). Flatten everything but the batch dim.
        if x.ndim > 2:
            x = x.reshape(x.shape[0], -1)
        # bf16 activations: the kernel is HBM-read-bound on x and the MXU
        # accumulates in f32, so this halves roofline bytes at negligible error.
        x = x.astype(jnp.bfloat16)
        M, K = x.shape
        # Tiny-M fast path: launch + slice overhead dominates a handful of
        # proposals; plain jnp.dot is strictly faster there.
        if not force_pallas and M * K * x.dtype.itemsize < (1 << 20):
            deltas = (jnp.dot(x, self.weight, preferred_element_type=jnp.float32)
                      + self.bias)
            return (self.num_classes, deltas)
        deltas = bbox_pred_pallas(x, self.w_pad, self.b_pad, self.box_dim)
        return (self.num_classes, deltas)


if __name__ == "__main__":
    key = jax.random.PRNGKey(0)
    k_x, k_w = jax.random.split(key)

    # Small, module-consistent shapes: N=2 proposals, C=4, H=W=16 pooled feature.
    N, C, H, W = 2, 4, 16, 16
    box_dim = 4          # XYXY box2box_transform weights -> 4
    num_classes = 3

    x = jax.random.normal(k_x, (N, C, H, W), dtype=jnp.float32)  # NCHW

    model = BoxOnlyLayersPallas(C, H, W, box_dim, num_classes, k_w)

    # Force the Pallas path so the kernel is exercised even at this tiny M.
    ncls, deltas = model(x, force_pallas=True)
    deltas = jax.block_until_ready(deltas)

    # Reference with the same bf16 operands and f32 accumulation.
    x_bf = x.reshape(N, -1).astype(jnp.bfloat16)
    ref = (jnp.dot(x_bf, model.weight, preferred_element_type=jnp.float32)
           + model.bias)
    ref = jax.block_until_ready(ref)

    assert ncls == num_classes
    assert deltas.shape == (N, box_dim)
    assert deltas.dtype == jnp.float32
    assert jnp.allclose(deltas, ref, atol=1e-4, rtol=1e-4)

    # Loose sanity check against a full-f32 reference (bf16 quantization of x
    # is the only remaining difference).
    ref_f32 = x.reshape(N, -1) @ model.weight.astype(jnp.float32) + model.bias
    assert jnp.allclose(deltas, ref_f32, atol=1e-3, rtol=5e-2)

    # Also exercise the tiny-M jnp.dot dispatch path for consistency.
    ncls2, deltas_small = model(x)
    assert ncls2 == num_classes
    assert jnp.allclose(deltas_small, deltas, atol=1e-4, rtol=1e-4)

    print("KERNEL_OK")
</pallas_src>

<mosaic_0001>
module attributes {stable_mosaic.version = 11 : i64} {
  func.func @_linear_kernel(%arg0: i32, %arg1: memref<8x1024xbf16, #tpu.memory_space<vmem>>, %arg2: memref<1024x128xbf16, #tpu.memory_space<vmem>>, %arg3: memref<1x128xf32, #tpu.memory_space<vmem>>, %arg4: memref<8x128xf32, #tpu.memory_space<vmem>>) attributes {dimension_semantics = [#tpu.dimension_semantics<parallel>], iteration_bounds = array<i64: 1>, scalar_prefetch = 0 : i64, scratch_operands = 0 : i64, tpu.core_type = #tpu.core_type<tc>, window_params = [{transform_indices = @transform_0, window_bounds = array<i64: 8, 1024>}, {pipeline_mode = #tpu.pipeline_mode<synchronous>, transform_indices = @transform_1, window_bounds = array<i64: 1024, 128>}, {pipeline_mode = #tpu.pipeline_mode<synchronous>, transform_indices = @transform_2, window_bounds = array<i64: 1, 128>}, {transform_indices = @transform_3, window_bounds = array<i64: 8, 128>}]} {
    %c0 = arith.constant 0 : index
    %c0_0 = arith.constant 0 : index
    %0 = vector.load %arg1[%c0, %c0_0] : memref<8x1024xbf16, #tpu.memory_space<vmem>>, vector<8x1024xbf16>
    %c0_1 = arith.constant 0 : index
    %c0_2 = arith.constant 0 : index
    %1 = vector.load %arg2[%c0_1, %c0_2] : memref<1024x128xbf16, #tpu.memory_space<vmem>>, vector<1024x128xbf16>
    %cst = arith.constant dense<0.000000e+00> : vector<8x128xf32>
    %2 = tpu.matmul %0, %1, %cst {dimension_numbers = #tpu.dot_dimension_numbers<[1], [0], [0], [1], [0, 0, 1, 1], [], []>} : vector<8x1024xbf16>, vector<1024x128xbf16>, vector<8x128xf32> -> vector<8x128xf32>
    %c0_3 = arith.constant 0 : index
    %c0_4 = arith.constant 0 : index
    %3 = vector.load %arg3[%c0_3, %c0_4] : memref<1x128xf32, #tpu.memory_space<vmem>>, vector<1x128xf32>
    %4 = vector.broadcast %3 : vector<1x128xf32> to vector<8x128xf32>
    %5 = arith.addf %2, %4 : vector<8x128xf32>
    %c0_5 = arith.constant 0 : index
    %c0_6 = arith.constant 0 : index
    %6 = vector.load %arg4[%c0_5, %c0_6] : memref<8x128xf32, #tpu.memory_space<vmem>>, vector<8x128xf32>
    tpu.vector_store %arg4[%c0_5, %c0_6], %5 {strides = array<i32>} : memref<8x128xf32, #tpu.memory_space<vmem>>, vector<8x128xf32>,
    return
  }
  func.func @transform_0(%arg0: i32) -> (i32, i32) {
    %c0_i32 = arith.constant 0 : i32
    %c0_i32_0 = arith.constant 0 : i32
    return %arg0, %c0_i32 : i32, i32
  }
  func.func @transform_1(%arg0: i32) -> (i32, i32) {
    %c0_i32 = arith.constant 0 : i32
    %c0_i32_0 = arith.constant 0 : i32
    %c0_i32_1 = arith.constant 0 : i32
    return %c0_i32, %c0_i32_0 : i32, i32
  }
  func.func @transform_2(%arg0: i32) -> (i32, i32) {
    %c0_i32 = arith.constant 0 : i32
    %c0_i32_0 = arith.constant 0 : i32
    %c0_i32_1 = arith.constant 0 : i32
    return %c0_i32, %c0_i32_0 : i32, i32
  }
  func.func @transform_3(%arg0: i32) -> (i32, i32) {
    %c0_i32 = arith.constant 0 : i32
    %c0_i32_0 = arith.constant 0 : i32
    return %arg0, %c0_i32 : i32, i32
  }
}

</mosaic_0001>

<bundles_post_ra>
// kernel: tpu_custom_call.1
= control target key start
LH: loop header
LB: loop body
LE: loop exit
PB: predicated region body
PF: predicated region fallthrough
CT: control target
= control target key end

     0   :  { %8 = vsyncpa [#allocation3], 0  ;;  %s1218_s0 = inlined_call_operand.hbm [shape: bf16[2,1024], index: 0, kind: input, shape index: {}]   ;;  %s1219_s1 = inlined_call_operand.hbm [shape: bf16[1024,128], index: 1, kind: input, shape index: {}]   ;;  %s1220_s2 = inlined_call_operand.vmem [shape: f32[1,128], index: 2, kind: input, shape index: {}]   ;;  %s1221_s3 = inlined_call_operand.hbm [shape: f32[2,128], index: 3, kind: output, shape index: {}]  }
   0x1   :  { %9 = vsyncpa [#allocation6], 0 }
   0x2   :  { %10 = vsyncpa [#allocation4], 0 }
   0x3   :  { %15 = vsyncadd [#allocation3], 384  ;;  %s1131_s12 = smov [#allocation2]   ;;  %s1059_s16 = scalar_lea.hbm %s1218_s0, 128 }
   0x4   :  { %s16_s13 = sshll.u32 %s1131_s12, 4  ;;  %p1060_p0 = scmp.ne.s32.totalorder %s1218_s0, %s1059_s16  ;;  %s17_s13 = int_to_ptr.vmem [resolvable:$true] %s16_s13 }
   0x5   :  { %p1063_p1 = scmp.lt.u32.totalorder %s1059_s16, %s1218_s0 }
   0x7   :  { %p1065_p2 = pnand %p1063_p1, %p1060_p0 }
   0x9   :  { %1068 = shalt.err (!%p1065_p2)
}
   0xa   :  { %s1069_s21 = scalar_lea.vmem %s17_s13, 128  ;;  %s1073_s22 = scalar_lea.vmem %s17_s13, 512 }
   0xb   :  { %p1070_p3 = scmp.ne.s32.totalorder %s17_s13, %s1069_s21  ;;  %p1074_p4 = scmp.lt.s32.totalorder %s17_s13, %s17_s13 }
   0xc   :  { %p1075_p5 = scmp.lt.s32.totalorder %s1073_s22, %s1069_s21 }
   0xe   :  { %p1076_p6 = por %p1075_p5, %p1074_p4 }
  0x10   :  { %p1077_p7 = pnand %p1076_p6, %p1070_p3 }
  0x12   :  { %1080 = shalt.err (!%p1077_p7)
}
  0x13   :  { %s1132_s23 = smov 128   ;;  %s1133_s24 = smov 8  }
  0x14   :  { %22 = dma.hbm_to_vmem [thread:$0]  %s1218_s0, 128, %s17_s13, [#allocation3], %s1132_s23, %s1132_s23, %s1133_s24  }
  0x15   :  { %s1134_s27 = smov [#allocation5]   ;;  %s1081_s4 = scalar_lea.hbm %s1219_s1, 8192 }
  0x16   :  { %s28_s28 = sshll.u32 %s1134_s27, 4  ;;  %p1082_p8 = scmp.ne.s32.totalorder %s1219_s1, %s1081_s4  ;;  %s29_s28 = int_to_ptr.vmem [resolvable:$true] %s28_s28 }
  0x17   :  { %p1085_p9 = scmp.lt.u32.totalorder %s1081_s4, %s1219_s1 }
  0x19   :  { %p1087_p10 = pnand %p1085_p9, %p1082_p8 }
  0x1b   :  { %1090 = shalt.err (!%p1087_p10)
}
  0x1c   :  { %s1091_s9 = scalar_lea.vmem %s29_s28, 8192  ;;  %p1096_p12 = scmp.lt.s32.totalorder %s29_s28, %s29_s28 }
  0x1d   :  { %p1092_p11 = scmp.ne.s32.totalorder %s29_s28, %s1091_s9  ;;  %p1097_p13 = scmp.lt.s32.totalorder %s1091_s9, %s1091_s9 }
  0x1f   :  { %p1098_p0 = por %p1097_p13, %p1096_p12 }
  0x21   :  { %p1099_p1 = pnand %p1098_p0, %p1092_p11 }
  0x23   :  { %1102 = shalt.err (!%p1099_p1)
}
  0x24   :  { %s1135_s0 = smov 64   ;;  %s1136_s10 = smov 4  }
  0x25   :  { %34 = dma.hbm_to_vmem [thread:$0]  %s1219_s1, 8192, %s29_s28, [#allocation6], %s1135_s0, %s1135_s0, %s1136_s10  }
  0x26   :  { %1125 = dma.done.wait [#allocation3], 512  }
  0x27   :  { %1126 = vsyncadd [#allocation3], 4294966784 }
  0x28   :  { %1127 = dma.done.wait [#allocation6], 8192  }
  0x29   :  { %1128 = vsyncadd [#allocation6], 4294959104  ;;  %v989_v0 = vld [vmem:[#allocation5 + $0x40] sm:$0xff]   ;;  %v993_v4 = vld [vmem:[#allocation5 + $0x48] sm:$0xff]   ;;  %v1137_v24 = vmov 1966171168   ;;  %v194_v26 = vlaneseq }
  0x2a   :  { %v990_v1 = vld [vmem:[#allocation5 + $0xc0] sm:$0xff]   ;;  %891 = vmatprep.subr.bf16.mxu0 %v989_v0  ;;  %v994_v5 = vld [vmem:[#allocation5 + $0xc8] sm:$0xff]   ;;  %v997_v8 = vld [vmem:[#allocation5 + $0x50] sm:$0xff]   ;;  %v192_v25 = vunpack.c.l.s4 %v1137_v24 }
  0x2b   :  { %v991_v2 = vld [vmem:[#allocation5] sm:$0xff]   ;;  %913 = vmatprep.subr.bf16.mxu1 %v990_v1  ;;  %v995_v6 = vld [vmem:[#allocation5 + $0x8] sm:$0xff]   ;;  %v998_v9 = vld [vmem:[#allocation5 + $0xd0] sm:$0xff]   ;;  %v195_v32 = vshrl.u32 %v194_v26, 7 }
  0x2c   :  { %v992_v3 = vld [vmem:[#allocation5 + $0x80] sm:$0xff]   ;;  %892 = vmatpush3.bf16.msra.mxu0 %v991_v2  ;;  %v996_v7 = vld [vmem:[#allocation5 + $0x88] sm:$0xff]   ;;  %v999_v10 = vld [vmem:[#allocation5 + $0x10] sm:$0xff]   ;;  %v193_v31 = vunpack.c.0.s8 %v192_v25 }
  0x2d   :  { %914 = vmatpush3.bf16.msra.mxu1 %v992_v3  ;;  %893 = vmatprep.subr.bf16.mxu0 %v993_v4  ;;  %v1000_v11 = vld [vmem:[#allocation5 + $0x90] sm:$0xff]   ;;  %v1001_v12 = vld [vmem:[#allocation5 + $0x58] sm:$0xff]   ;;  %v1005_v16 = vld [vmem:[#allocation5 + $0x60] sm:$0xff]  }
  0x2e   :  { %915 = vmatprep.subr.bf16.mxu1 %v994_v5  ;;  %v1002_v13 = vld [vmem:[#allocation5 + $0xd8] sm:$0xff]   ;;  %v1006_v17 = vld [vmem:[#allocation5 + $0xe0] sm:$0xff]   ;;  %v1009_v20 = vld [vmem:[#allocation5 + $0x68] sm:$0xff]   ;;  %v1185_v37 = vsub.s32 %v193_v31, %v195_v32 }
  0x2f   :  { %v1003_v14 = vld [vmem:[#allocation5 + $0x18] sm:$0xff]   ;;  %v1007_v18 = vld [vmem:[#allocation5 + $0x20] sm:$0xff]   ;;  %v1010_v21 = vld [vmem:[#allocation5 + $0xe8] sm:$0xff]  }
  0x30   :  { %894 = vmatpush3.bf16.msra.mxu0 %v995_v6  ;;  %v1004_v15 = vld [vmem:[#allocation5 + $0x98] sm:$0xff]   ;;  %v1008_v19 = vld [vmem:[#allocation5 + $0xa0] sm:$0xff]   ;;  %v1011_v22 = vld [vmem:[#allocation5 + $0x28] sm:$0xff]  }
  0x31   :  { %916 = vmatpush3.bf16.msra.mxu1 %v996_v7  ;;  %895 = vmatprep.subr.bf16.mxu0 %v997_v8  ;;  %v1012_v23 = vld [vmem:[#allocation5 + $0xa8] sm:$0xff]   ;;  %v1013_v27 = vld [vmem:[#allocation5 + $0x70] sm:$0xff]   ;;  %v1017_v33 = vld [vmem:[#allocation5 + $0x78] sm:$0xff]  }
  0x32   :  { %917 = vmatprep.subr.bf16.mxu1 %v998_v9  ;;  %v1014_v28 = vld [vmem:[#allocation5 + $0xf0] sm:$0xff]   ;;  %v1018_v34 = vld [vmem:[#allocation5 + $0xf8] sm:$0xff]   ;;  %v1021_v38 = vld [vmem:[#allocation2] ss:$8 sps:$4 sm:$0xff]  }
  0x33   :  { %v1015_v29 = vld [vmem:[#allocation5 + $0x30] sm:$0xff]   ;;  %v1019_v35 = vld [vmem:[#allocation5 + $0x38] sm:$0xff]   ;;  %v1023_v39 = vld [vmem:[#allocation2 + $0x4] ss:$8 sps:$4 sm:$0xff]   ;;  %v197_v42 = vrot.slane %v1021_v38, %v1185_v37 }
  0x34   :  { %896 = vmatpush3.bf16.msra.mxu0 %v999_v10  ;;  %v1016_v30 = vld [vmem:[#allocation5 + $0xb0] sm:$0xff]   ;;  %v1020_v36 = vld [vmem:[#allocation5 + $0xb8] sm:$0xff]   ;;  %v1027_v43 = vld [vmem:[#allocation5 + $0x140] sm:$0xff]   ;;  %v1189_v44 = vrot.slane %v1023_v39, %v1185_v37 }
  0x35   :  { %918 = vmatpush3.bf16.msra.mxu1 %v1000_v11  ;;  %897 = vmatprep.subr.bf16.mxu0 %v1001_v12  ;;  %v1024_v40 = vld [vmem:[#allocation2 + $0x10] ss:$8 sps:$4 sm:$0xff]   ;;  %v1026_v41 = vld [vmem:[#allocation2 + $0x14] ss:$8 sps:$4 sm:$0xff]   ;;  %v1028_v46 = vld [vmem:[#allocation5 + $0x1c0] sm:$0xff]  }
  0x36   :  { %919 = vmatprep.subr.bf16.mxu1 %v1002_v13  ;;  %v211_v45 = vrot.slane %v1024_v40, %v1185_v37  ;;  %v1193_v47 = vrot.slane %v1026_v41, %v1185_v37  ;;  %v1029_v53 = vld [vmem:[#allocation5 + $0x100] sm:$0xff]   ;;  %v1031_v55 = vld [vmem:[#allocation5 + $0x148] sm:$0xff]   ;;  %v1035_v62 = vld [vmem:[#allocation5 + $0x150] sm:$0xff]  }
  0x37   :  { %v1030_v58 = vld [vmem:[#allocation5 + $0x180] sm:$0xff]   ;;  %v1032_v59 = vld [vmem:[#allocation5 + $0x1c8] sm:$0xff]   ;;  %v1036_v0 = vld [vmem:[#allocation5 + $0x1d0] sm:$0xff]  }
  0x38   :  { %898 = vmatpush3.bf16.msra.mxu0 %v1003_v14  ;;  %v220_v48 = vcombine.high %v197_v42, %v211_v45  ;;  %v219_v49 = vcombine.low %v197_v42, %v211_v45  ;;  %v222_v50 = vcombine.high %v1189_v44, %v1193_v47  ;;  %v1033_v61 = vld [vmem:[#allocation5 + $0x108] sm:$0xff]   ;;  %v1037_v1 = vld [vmem:[#allocation5 + $0x110] sm:$0xff]   ;;  %v1039_v2 = vld [vmem:[#allocation5 + $0x158] sm:$0xff]  }
  0x39   :  { %920 = vmatpush3.bf16.msra.mxu1 %v1004_v15  ;;  %899 = vmatprep.subr.bf16.mxu0 %v1005_v16  ;;  %v1034_v63 = vld [vmem:[#allocation5 + $0x188] sm:$0xff]   ;;  %v1038_v3 = vld [vmem:[#allocation5 + $0x190] sm:$0xff]   ;;  %v1040_v4 = vld [vmem:[#allocation5 + $0x1d8] sm:$0xff]  }
  0x3a   :  { %921 = vmatprep.subr.bf16.mxu1 %v1006_v17  ;;  %v243_v51 = vrot.slane %v220_v48, %v1185_v37  ;;  %v229_v52 = vrot.slane %v219_v49, %v1185_v37  ;;  %v250_v54 = vrot.slane %v222_v50, %v1185_v37  ;;  %v1041_v5 = vld [vmem:[#allocation5 + $0x118] sm:$0xff]   ;;  %v1043_v6 = vld [vmem:[#allocation5 + $0x160] sm:$0xff]   ;;  %v1047_v10 = vld [vmem:[#allocation5 + $0x168] sm:$0xff]  }
  0x3b   :  { %v1042_v7 = vld [vmem:[#allocation5 + $0x198] sm:$0xff]   ;;  %v1044_v8 = vld [vmem:[#allocation5 + $0x1e0] sm:$0xff]   ;;  %v1048_v12 = vld [vmem:[#allocation5 + $0x1e8] sm:$0xff]  }
  0x3c   :  { %900 = vmatpush3.bf16.msra.mxu0 %v1007_v18  ;;  %679 = vmatprep.mubr.bf16.mxu0 %v243_v51  ;;  %v253_v56 = vcombine.high %v243_v51, %v243_v51  ;;  %v251_v57 = vcombine.high %v229_v52, %v229_v52  ;;  %v254_v60 = vcombine.high %v250_v54, %v250_v54  ;;  %v1045_v9 = vld [vmem:[#allocation5 + $0x120] sm:$0xff]   ;;  %v1049_v13 = vld [vmem:[#allocation5 + $0x128] sm:$0xff]   ;;  %v1051_v14 = vld [vmem:[#allocation5 + $0x170] sm:$0xff]  }
  0x3d   :  { %922 = vmatpush3.bf16.msra.mxu1 %v1008_v19  ;;  %901 = vmatprep.subr.bf16.mxu0 %v1009_v20  ;;  %v1046_v11 = vld [vmem:[#allocation5 + $0x1a0] sm:$0xff]   ;;  %v1050_v15 = vld [vmem:[#allocation5 + $0x1a8] sm:$0xff]   ;;  %v1052_v16 = vld [vmem:[#allocation5 + $0x1f0] sm:$0xff]   ;;  %v221_v19 = vcombine.low %v1189_v44, %v1193_v47 }
  0x3e   :  { %923 = vmatprep.subr.bf16.mxu1 %v1010_v21  ;;  %719 = vmatprep.mubr.bf16.mxu1 %v253_v56  ;;  %v1053_v17 = vld [vmem:[#allocation5 + $0x130] sm:$0xff]   ;;  %v1055_v18 = vld [vmem:[#allocation5 + $0x178] sm:$0xff]  }
  0x3f   :  { %v1054_v20 = vld [vmem:[#allocation5 + $0x1b0] sm:$0xff]   ;;  %v1056_v21 = vld [vmem:[#allocation5 + $0x1f8] sm:$0xff]  }
  0x40   :  { %902 = vmatpush3.bf16.msra.mxu0 %v1011_v22  ;;  %v1057_v22 = vld [vmem:[#allocation5 + $0x138] sm:$0xff]  }
  0x41   :  { %924 = vmatpush3.bf16.msra.mxu1 %v1012_v23  ;;  %903 = vmatprep.subr.bf16.mxu0 %v1013_v27  ;;  %v236_v23 = vrot.slane %v221_v19, %v1185_v37  ;;  %v1058_v24 = vld [vmem:[#allocation5 + $0x1b8] sm:$0xff]   ;;  %v826_v27 = vld [vmem:[%s1220_s2] ss:$0 sm:$0xff] }
  0x42   :  { %925 = vmatprep.subr.bf16.mxu1 %v1014_v28 }
  0x43   :  { %v252_v25 = vcombine.high %v236_v23, %v236_v23 }
  0x44   :  { %904 = vmatpush3.bf16.msra.mxu0 %v1015_v29 }
  0x45   :  { %926 = vmatpush3.bf16.msra.mxu1 %v1016_v30  ;;  %905 = vmatprep.subr.bf16.mxu0 %v1017_v33 }
  0x46   :  { %927 = vmatprep.subr.bf16.mxu1 %v1018_v34 }
  0x48   :  { %906 = vmatpush3.bf16.msra.mxu0 %v1019_v35 }
  0x49   :  { %928 = vmatpush3.bf16.msra.mxu1 %v1020_v36  ;;  %935 = vmatprep.subr.bf16.mxu0 %v1027_v43 }
  0x4a   :  { %957 = vmatprep.subr.bf16.mxu1 %v1028_v46 }
  0x4b   :  { %680 = vmatmul.mubr.bf16.vlgmr.msra.gmra.mrb[0].mxu0 %v229_v52 }
  0x4c   :  { %936 = vmatpush3.bf16.msra.mxu0 %v1029_v53  ;;  %720 = vmatmul.mubr.bf16.vlgmr.msra.gmra.mrb[0].mxu1 %v251_v57 }
  0x4d   :  { %937 = vmatprep.subr.bf16.mxu0 %v1031_v55  ;;  %958 = vmatpush3.bf16.msra.mxu1 %v1030_v58 }
  0x4e   :  { %759 = vmatprep.mubr.bf16.mxu0 %v250_v54  ;;  %959 = vmatprep.subr.bf16.mxu1 %v1032_v59 }
  0x4f   :  { %799 = vmatprep.mubr.bf16.mxu1 %v254_v60 }
  0x50   :  { %938 = vmatpush3.bf16.msra.mxu0 %v1033_v61 }
  0x51   :  { %939 = vmatprep.subr.bf16.mxu0 %v1035_v62  ;;  %960 = vmatpush3.bf16.msra.mxu1 %v1034_v63 }
  0x52   :  { %961 = vmatprep.subr.bf16.mxu1 %v1036_v0 }
  0x54   :  { %940 = vmatpush3.bf16.msra.mxu0 %v1037_v1 }
  0x55   :  { %941 = vmatprep.subr.bf16.mxu0 %v1039_v2  ;;  %962 = vmatpush3.bf16.msra.mxu1 %v1038_v3 }
  0x56   :  { %963 = vmatprep.subr.bf16.mxu1 %v1040_v4 }
  0x58   :  { %942 = vmatpush3.bf16.msra.mxu0 %v1041_v5 }
  0x59   :  { %943 = vmatprep.subr.bf16.mxu0 %v1043_v6  ;;  %964 = vmatpush3.bf16.msra.mxu1 %v1042_v7 }
  0x5a   :  { %965 = vmatprep.subr.bf16.mxu1 %v1044_v8 }
  0x5c   :  { %944 = vmatpush3.bf16.msra.mxu0 %v1045_v9 }
  0x5d   :  { %945 = vmatprep.subr.bf16.mxu0 %v1047_v10  ;;  %966 = vmatpush3.bf16.msra.mxu1 %v1046_v11 }
  0x5e   :  { %967 = vmatprep.subr.bf16.mxu1 %v1048_v12 }
  0x60   :  { %946 = vmatpush3.bf16.msra.mxu0 %v1049_v13 }
  0x61   :  { %947 = vmatprep.subr.bf16.mxu0 %v1051_v14  ;;  %968 = vmatpush3.bf16.msra.mxu1 %v1050_v15 }
  0x62   :  { %969 = vmatprep.subr.bf16.mxu1 %v1052_v16 }
  0x64   :  { %948 = vmatpush3.bf16.msra.mxu0 %v1053_v17 }
  0x65   :  { %949 = vmatprep.subr.bf16.mxu0 %v1055_v18  ;;  %970 = vmatpush3.bf16.msra.mxu1 %v1054_v20 }
  0x66   :  { %971 = vmatprep.subr.bf16.mxu1 %v1056_v21 }
  0x68   :  { %950 = vmatpush3.bf16.msra.mxu0 %v1057_v22 }
  0x69   :  { %972 = vmatpush3.bf16.msra.mxu1 %v1058_v24 }
  0x6b   :  { %760 = vmatmul.mubr.bf16.vlgmr.msra.gmra.mrb[4].mxu0 %v236_v23 }
  0x6c   :  { %800 = vmatmul.mubr.bf16.vlgmr.msra.gmra.mrb[4].mxu1 %v252_v25 }
 0x11e   :  { %v907_v26 = vpop.f32.mrb[0].mxu0 }
 0x11f   :  { %v908_v28 = vpop.f32.mrb[1].mxu0  ;;  %v929_v29 = vpop.f32.mrb[0].mxu1 }
 0x120   :  { %v909_v30 = vadd.f32 %v908_v28, %v907_v26  ;;  %v910_v31 = vpop.f32.mrb[2].mxu0  ;;  %v930_v32 = vpop.f32.mrb[1].mxu1 }
 0x121   :  { %v911_v33 = vpop.f32.mrb[3].mxu0  ;;  %v931_v35 = vadd.f32 %v930_v32, %v929_v29  ;;  %v932_v36 = vpop.f32.mrb[2].mxu1 }
 0x122   :  { %v682_v34 = vadd.f32 %v909_v30, %v826_v27  ;;  %v933_v37 = vpop.f32.mrb[3].mxu1 }
 0x124   :  { %v722_v38 = vadd.f32 %v931_v35, %v682_v34 }
 0x13e   :  { %v951_v39 = vpop.f32.mrb[4].mxu0 }
 0x13f   :  { %v952_v40 = vpop.f32.mrb[5].mxu0  ;;  %v973_v41 = vpop.f32.mrb[4].mxu1 }
 0x140   :  { %v953_v42 = vadd.f32 %v952_v40, %v951_v39  ;;  %v954_v43 = vpop.f32.mrb[6].mxu0  ;;  %v974_v44 = vpop.f32.mrb[5].mxu1 }
 0x141   :  { %v955_v45 = vpop.f32.mrb[7].mxu0  ;;  %v975_v47 = vadd.f32 %v974_v44, %v973_v41  ;;  %v976_v48 = vpop.f32.mrb[6].mxu1 }
 0x142   :  { %v762_v46 = vadd.f32 %v953_v42, %v722_v38  ;;  %v977_v49 = vpop.f32.mrb[7].mxu1 }
 0x144   :  { %v802_v50 = vadd.f32 %v975_v47, %v762_v46 }
 0x146   :  { %807 = vst [vmem:[#allocation7] sm:$0xff] %v802_v50 }
 0x147   :  { %812 = vsyncadd [#allocation4], 96  ;;  %s1138_s2 = smov [#allocation7]  }
 0x148   :  { %s813_s14 = sshll.u32 %s1138_s2, 4  ;;  %s814_s14 = int_to_ptr.vmem [resolvable:$true] %s813_s14 }
 0x149   :  { %s1103_s15 = scalar_lea.vmem %s814_s14, 32  ;;  %s1107_s16 = scalar_lea.vmem %s814_s14, 128 }
 0x14a   :  { %p1104_p2 = scmp.ne.s32.totalorder %s814_s14, %s1103_s15  ;;  %p1108_p3 = scmp.lt.s32.totalorder %s814_s14, %s814_s14 }
 0x14b   :  { %p1109_p4 = scmp.lt.s32.totalorder %s1107_s16, %s1103_s15 }
 0x14d   :  { %p1110_p5 = por %p1109_p4, %p1108_p3 }
 0x14f   :  { %p1111_p6 = pnand %p1110_p5, %p1104_p2 }
 0x151   :  { %1114 = shalt.err (!%p1111_p6)
}
 0x152   :  { %s1115_s19 = scalar_lea.hbm %s1221_s3, 32 }
 0x153   :  { %p1116_p7 = scmp.ne.s32.totalorder %s1221_s3, %s1115_s19  ;;  %p1119_p8 = scmp.lt.u32.totalorder %s1115_s19, %s1221_s3 }
 0x155   :  { %p1121_p9 = pnand %p1119_p8, %p1116_p7 }
 0x157   :  { %1124 = shalt.err (!%p1121_p9)
}
 0x158   :  { %s1139_s24 = smov 32   ;;  %s1140_s25 = smov 2  }
 0x159   :  { %819 = dma.vmem_to_hbm [thread:$0]  %s814_s14, 32, %s1221_s3, [#allocation4], %s1139_s24, %s1139_s24, %s1140_s25  }
 0x15a   :  { %1129 = dma.done.wait [#allocation4], 128  }
 0x15b   :  { %1130 = vsyncadd [#allocation4], 4294967168 }
 0x15c   :  { %823 = vsyncpa [#allocation3], 1 }
 0x15d   :  { %824 = vsyncpa [#allocation6], 1 }
 0x15e   :  { %825 = vsyncpa [#allocation4], 1 }

</bundles_post_ra>
